<compile_context>
chip_gen: v5e
topology: v5e:2x2
jax: 0.10.0
libtpu: 0.0.40
codegen_flags: <defaults>
</compile_context>

<pallas_src>
import functools

import jax
import jax.numpy as jnp
from jax import lax
from jax.experimental import pallas as pl
from jax.experimental.pallas import tpu as pltpu


def _round_up(x, m):
    return ((x + m - 1) // m) * m


def _mlp_kernel(x_ref, w_in_ref, b_in_ref, w_h_ref, b_h_ref,
                w_out_ref, b_out_ref, o_ref, *, n_layers, norm):
    # ---- input projection: native-dtype operands, f32 accumulation ----
    h = (jnp.dot(x_ref[...], w_in_ref[...], preferred_element_type=jnp.float32)
         + b_in_ref[...].astype(jnp.float32))

    def residual_block(h, w, b):
        # h stays f32 on the MXU LHS (matches the reference; no per-layer
        # down-cast of the accumulator when weights are low precision).
        z = (jnp.dot(h, w, preferred_element_type=jnp.float32)
             + b.astype(jnp.float32))
        return z * jax.nn.sigmoid(z) + h       # SiLU (f32 VPU/EUP) + residual

    # ---- hidden residual blocks: x = silu(W x + b) + x ----
    if n_layers <= 16:
        # Static unroll gives the LLO scheduler full cross-layer visibility.
        for i in range(n_layers):
            h = residual_block(h, w_h_ref[i], b_h_ref[i:i + 1, :])
    else:
        # Very deep stacks: fori_loop keeps only one layer's weights + h live.
        def body(i, h):
            return residual_block(h, w_h_ref[i], b_h_ref[pl.ds(i, 1), :])
        h = lax.fori_loop(0, n_layers, body, h)

    # ---- optional layer norm over the feature dim (no affine params) ----
    if norm:
        mean = jnp.mean(h, axis=-1, keepdims=True)
        var = jnp.mean((h - mean) * (h - mean), axis=-1, keepdims=True)
        h = (h - mean) * lax.rsqrt(var + 1e-5)

    # ---- output projection (lane-dense padded width -> unmasked vst) ----
    out = (jnp.dot(h, w_out_ref[...], preferred_element_type=jnp.float32)
           + b_out_ref[...].astype(jnp.float32))
    o_ref[...] = out.astype(o_ref.dtype)


def mlp_forward(x, params, *, n_layers, norm, batch_tile=2048):
    """x: [B, input_dims] -> [B, output_dims]."""
    w_in, b_in = params["w_in"], params["b_in"]
    w_h, b_h = params["w_h"], params["b_h"]
    w_out, b_out = params["w_out"], params["b_out"]

    B, d_in = x.shape
    H = w_in.shape[1]
    d_out = w_out.shape[1]

    # ---- lane-dense output: pad the output feature dim to a 128 multiple so
    # the kernel's store is a full-width vst; sliced off after the call.
    d_out_p = _round_up(d_out, 128)
    if d_out_p != d_out:
        w_out = jnp.pad(w_out, ((0, 0), (0, d_out_p - d_out)))
        b_out = jnp.pad(b_out, ((0, 0), (0, d_out_p - d_out)))

    # ---- batch tiling: only round the batch up to a sublane multiple (<=7
    # rows).  The last grid tile may be ragged; Pallas discards OOB writes and
    # every row's computation is independent, so correctness is unaffected and
    # we avoid materializing a full padded copy of the HBM-bound input.
    b8 = _round_up(B, 8)
    if b8 != B:
        x = jnp.pad(x, ((0, b8 - B), (0, 0)))

    if b8 <= batch_tile:
        # Keep >= 2 grid steps once there is enough work, so the "parallel"
        # batch axis can split across the 2 TensorCores on v7x.
        tile_b = _round_up(pl.cdiv(b8, 2), 8) if b8 >= 512 else b8
    else:
        n_steps = pl.cdiv(b8, batch_tile)
        tile_b = _round_up(pl.cdiv(b8, n_steps), 8)
    grid = (pl.cdiv(b8, tile_b),)

    # ---- explicit VMEM budget (double-buffered activation tiles + resident
    # params + f32 intermediates) with headroom; safe against v7x's 64 MiB.
    itemsize = x.dtype.itemsize
    param_bytes = sum(int(p.size) * p.dtype.itemsize
                      for p in (w_in, b_in, w_h, b_h, w_out, b_out))
    act_tile_bytes = tile_b * (d_in + d_out_p) * itemsize
    f32_scratch = 6 * tile_b * H * 4
    vmem_needed = 2 * act_tile_bytes + 2 * param_bytes + f32_scratch
    vmem_limit = int(min(max(vmem_needed * 3 // 2, 16 * 1024 * 1024),
                         48 * 1024 * 1024))

    flops = 2 * b8 * (d_in * H + n_layers * H * H + H * d_out_p)
    transcendentals = b8 * (H * n_layers + (1 if norm else 0))
    bytes_accessed = (b8 * d_in * itemsize + param_bytes
                      + b8 * d_out_p * itemsize)

    kernel = functools.partial(_mlp_kernel, n_layers=n_layers, norm=norm)

    out = pl.pallas_call(
        kernel,
        out_shape=jax.ShapeDtypeStruct((b8, d_out_p), x.dtype),
        grid=grid,
        in_specs=[
            # activations: tiled over the batch grid axis
            pl.BlockSpec((tile_b, d_in), lambda i: (i, 0)),
            # weights / biases: VMEM-resident (same block every grid step)
            pl.BlockSpec((d_in, H), lambda i: (0, 0)),
            pl.BlockSpec((1, H), lambda i: (0, 0)),
            pl.BlockSpec((n_layers, H, H), lambda i: (0, 0, 0)),
            pl.BlockSpec((n_layers, H), lambda i: (0, 0)),
            pl.BlockSpec((H, d_out_p), lambda i: (0, 0)),
            pl.BlockSpec((1, d_out_p), lambda i: (0, 0)),
        ],
        out_specs=pl.BlockSpec((tile_b, d_out_p), lambda i: (i, 0)),
        compiler_params=pltpu.CompilerParams(
            dimension_semantics=("parallel",),
            vmem_limit_bytes=vmem_limit),
        cost_estimate=pl.CostEstimate(
            flops=flops,
            transcendentals=transcendentals,
            bytes_accessed=bytes_accessed),
    )(x, w_in, b_in, w_h, b_h, w_out, b_out)

    return out[:B, :d_out]


def init_params(key, input_dims, hidden_dims, output_dims, n_layers,
                dtype=jnp.float32):
    """Deterministic synthetic parameter init (shapes match the PyTorch module)."""
    ks = jax.random.split(key, 6)
    scale_in = 1.0 / jnp.sqrt(input_dims)
    scale_h = 1.0 / jnp.sqrt(hidden_dims)
    return {
        "w_in": (jax.random.normal(ks[0], (input_dims, hidden_dims)) * scale_in).astype(dtype),
        "b_in": (jax.random.normal(ks[1], (1, hidden_dims)) * 0.01).astype(dtype),
        "w_h": (jax.random.normal(ks[2], (n_layers, hidden_dims, hidden_dims)) * scale_h).astype(dtype),
        "b_h": (jax.random.normal(ks[3], (n_layers, hidden_dims)) * 0.01).astype(dtype),
        "w_out": (jax.random.normal(ks[4], (hidden_dims, output_dims)) * scale_h).astype(dtype),
        "b_out": (jax.random.normal(ks[5], (1, output_dims)) * 0.01).astype(dtype),
    }


def mlp_reference(x, params, *, n_layers, norm):
    """Pure-JAX reference mirroring the PyTorch forward pass."""
    h = x @ params["w_in"] + params["b_in"]
    for i in range(n_layers):
        z = h @ params["w_h"][i] + params["b_h"][i]
        h = jax.nn.silu(z) + h
    if norm:
        mean = jnp.mean(h, axis=-1, keepdims=True)
        var = jnp.mean((h - mean) ** 2, axis=-1, keepdims=True)
        h = (h - mean) * lax.rsqrt(var + 1e-5)
    return h @ params["w_out"] + params["b_out"]


if __name__ == "__main__":
    # Config: input_dims=16, hidden_dims=32, output_dims=8, n_layers=2, norm=True
    INPUT_DIMS, HIDDEN_DIMS, OUTPUT_DIMS, N_LAYERS, NORM = 16, 32, 8, 2, True

    key = jax.random.PRNGKey(0)
    k_x, k_p, k_x2 = jax.random.split(key, 3)
    params = init_params(k_p, INPUT_DIMS, HIDDEN_DIMS, OUTPUT_DIMS, N_LAYERS)

    # Small batch (single grid step; matches the module's typical shape).
    x = jax.random.normal(k_x, (2, INPUT_DIMS), dtype=jnp.float32)
    out = jax.block_until_ready(
        mlp_forward(x, params, n_layers=N_LAYERS, norm=NORM))
    ref = mlp_reference(x, params, n_layers=N_LAYERS, norm=NORM)
    assert out.shape == (2, OUTPUT_DIMS), out.shape
    assert jnp.allclose(out, ref, atol=1e-4, rtol=1e-4), "small-batch mismatch"

    # Modest batch exercising the multi-step, 2-way "parallel" grid path.
    x2 = jax.random.normal(k_x2, (640, INPUT_DIMS), dtype=jnp.float32)
    out2 = jax.block_until_ready(
        mlp_forward(x2, params, n_layers=N_LAYERS, norm=NORM))
    ref2 = mlp_reference(x2, params, n_layers=N_LAYERS, norm=NORM)
    assert out2.shape == (640, OUTPUT_DIMS), out2.shape
    assert jnp.allclose(out2, ref2, atol=1e-4, rtol=1e-4), "tiled-batch mismatch"

    print("KERNEL_OK")
</pallas_src>

<mosaic_0001>
module attributes {stable_mosaic.version = 11 : i64} {
  func.func @_mlp_kernel(%arg0: i32, %arg1: memref<8x16xf32, #tpu.memory_space<vmem>>, %arg2: memref<16x32xf32, #tpu.memory_space<vmem>>, %arg3: memref<1x32xf32, #tpu.memory_space<vmem>>, %arg4: memref<2x32x32xf32, #tpu.memory_space<vmem>>, %arg5: memref<2x32xf32, #tpu.memory_space<vmem>>, %arg6: memref<32x128xf32, #tpu.memory_space<vmem>>, %arg7: memref<1x128xf32, #tpu.memory_space<vmem>>, %arg8: memref<8x128xf32, #tpu.memory_space<vmem>>) attributes {dimension_semantics = [#tpu.dimension_semantics<parallel>], iteration_bounds = array<i64: 1>, scalar_prefetch = 0 : i64, scratch_operands = 0 : i64, tpu.core_type = #tpu.core_type<tc>, window_params = [{transform_indices = @transform_0, window_bounds = array<i64: 8, 16>}, {pipeline_mode = #tpu.pipeline_mode<synchronous>, transform_indices = @transform_1, window_bounds = array<i64: 16, 32>}, {pipeline_mode = #tpu.pipeline_mode<synchronous>, transform_indices = @transform_2, window_bounds = array<i64: 1, 32>}, {pipeline_mode = #tpu.pipeline_mode<synchronous>, transform_indices = @transform_3, window_bounds = array<i64: 2, 32, 32>}, {pipeline_mode = #tpu.pipeline_mode<synchronous>, transform_indices = @transform_4, window_bounds = array<i64: 2, 32>}, {pipeline_mode = #tpu.pipeline_mode<synchronous>, transform_indices = @transform_5, window_bounds = array<i64: 32, 128>}, {pipeline_mode = #tpu.pipeline_mode<synchronous>, transform_indices = @transform_6, window_bounds = array<i64: 1, 128>}, {transform_indices = @transform_7, window_bounds = array<i64: 8, 128>}]} {
    %c0 = arith.constant 0 : index
    %c0_0 = arith.constant 0 : index
    %0 = vector.load %arg1[%c0, %c0_0] : memref<8x16xf32, #tpu.memory_space<vmem>>, vector<8x16xf32>
    %c0_1 = arith.constant 0 : index
    %c0_2 = arith.constant 0 : index
    %1 = vector.load %arg2[%c0_1, %c0_2] : memref<16x32xf32, #tpu.memory_space<vmem>>, vector<16x32xf32>
    %cst = arith.constant dense<0.000000e+00> : vector<8x32xf32>
    %2 = tpu.matmul %0, %1, %cst {dimension_numbers = #tpu.dot_dimension_numbers<[1], [0], [0], [1], [0, 0, 1, 1], [], []>} : vector<8x16xf32>, vector<16x32xf32>, vector<8x32xf32> -> vector<8x32xf32>
    %c0_3 = arith.constant 0 : index
    %c0_4 = arith.constant 0 : index
    %3 = vector.load %arg3[%c0_3, %c0_4] : memref<1x32xf32, #tpu.memory_space<vmem>>, vector<1x32xf32>
    %4 = vector.broadcast %3 : vector<1x32xf32> to vector<8x32xf32>
    %5 = arith.addf %2, %4 : vector<8x32xf32>
    %c0_5 = arith.constant 0 : index
    %c0_6 = arith.constant 0 : index
    %c0_7 = arith.constant 0 : index
    %6 = vector.load %arg4[%c0_5, %c0_6, %c0_7] : memref<2x32x32xf32, #tpu.memory_space<vmem>>, vector<1x32x32xf32>
    %7 = vector.shape_cast %6 : vector<1x32x32xf32> to vector<32x32xf32>
    %c0_8 = arith.constant 0 : index
    %c0_9 = arith.constant 0 : index
    %8 = vector.load %arg5[%c0_8, %c0_9] : memref<2x32xf32, #tpu.memory_space<vmem>>, vector<1x32xf32>
    %cst_10 = arith.constant dense<0.000000e+00> : vector<8x32xf32>
    %9 = tpu.matmul %5, %7, %cst_10 {dimension_numbers = #tpu.dot_dimension_numbers<[1], [0], [0], [1], [0, 0, 1, 1], [], []>} : vector<8x32xf32>, vector<32x32xf32>, vector<8x32xf32> -> vector<8x32xf32>
    %10 = vector.broadcast %8 : vector<1x32xf32> to vector<8x32xf32>
    %11 = arith.addf %9, %10 : vector<8x32xf32>
    %12 = arith.negf %11 : vector<8x32xf32>
    %13 = math.exp %12 : vector<8x32xf32>
    %cst_11 = arith.constant 1.000000e+00 : f32
    %14 = vector.broadcast %cst_11 : f32 to vector<8x32xf32>
    %15 = arith.addf %14, %13 : vector<8x32xf32>
    %16 = arith.divf %14, %15 : vector<8x32xf32>
    %17 = arith.mulf %11, %16 : vector<8x32xf32>
    %18 = arith.addf %17, %5 : vector<8x32xf32>
    %c1 = arith.constant 1 : index
    %c0_12 = arith.constant 0 : index
    %c0_13 = arith.constant 0 : index
    %19 = vector.load %arg4[%c1, %c0_12, %c0_13] : memref<2x32x32xf32, #tpu.memory_space<vmem>>, vector<1x32x32xf32>
    %20 = vector.shape_cast %19 : vector<1x32x32xf32> to vector<32x32xf32>
    %c1_14 = arith.constant 1 : index
    %c0_15 = arith.constant 0 : index
    %21 = vector.load %arg5[%c1_14, %c0_15] : memref<2x32xf32, #tpu.memory_space<vmem>>, vector<1x32xf32>
    %cst_16 = arith.constant dense<0.000000e+00> : vector<8x32xf32>
    %22 = tpu.matmul %18, %20, %cst_16 {dimension_numbers = #tpu.dot_dimension_numbers<[1], [0], [0], [1], [0, 0, 1, 1], [], []>} : vector<8x32xf32>, vector<32x32xf32>, vector<8x32xf32> -> vector<8x32xf32>
    %23 = vector.broadcast %21 : vector<1x32xf32> to vector<8x32xf32>
    %24 = arith.addf %22, %23 : vector<8x32xf32>
    %25 = arith.negf %24 : vector<8x32xf32>
    %26 = math.exp %25 : vector<8x32xf32>
    %cst_17 = arith.constant 1.000000e+00 : f32
    %27 = vector.broadcast %cst_17 : f32 to vector<8x32xf32>
    %28 = arith.addf %27, %26 : vector<8x32xf32>
    %29 = arith.divf %27, %28 : vector<8x32xf32>
    %30 = arith.mulf %24, %29 : vector<8x32xf32>
    %31 = arith.addf %30, %18 : vector<8x32xf32>
    %cst_18 = arith.constant dense<0.000000e+00> : vector<8xf32>
    %32 = vector.multi_reduction <add>, %31, %cst_18 [1] : vector<8x32xf32> to vector<8xf32>
    %33 = vector.shape_cast %32 : vector<8xf32> to vector<8x1xf32>
    %cst_19 = arith.constant 3.200000e+01 : f32
    %34 = vector.broadcast %cst_19 : f32 to vector<8x1xf32>
    %35 = arith.divf %33, %34 : vector<8x1xf32>
    %36 = vector.broadcast %35 : vector<8x1xf32> to vector<8x32xf32>
    %37 = arith.subf %31, %36 : vector<8x32xf32>
    %38 = vector.broadcast %35 : vector<8x1xf32> to vector<8x32xf32>
    %39 = arith.subf %31, %38 : vector<8x32xf32>
    %40 = arith.mulf %37, %39 : vector<8x32xf32>
    %cst_20 = arith.constant dense<0.000000e+00> : vector<8xf32>
    %41 = vector.multi_reduction <add>, %40, %cst_20 [1] : vector<8x32xf32> to vector<8xf32>
    %42 = vector.shape_cast %41 : vector<8xf32> to vector<8x1xf32>
    %cst_21 = arith.constant 3.200000e+01 : f32
    %43 = vector.broadcast %cst_21 : f32 to vector<8x1xf32>
    %44 = arith.divf %42, %43 : vector<8x1xf32>
    %45 = vector.broadcast %35 : vector<8x1xf32> to vector<8x32xf32>
    %46 = arith.subf %31, %45 : vector<8x32xf32>
    %cst_22 = arith.constant 9.99999974E-6 : f32
    %47 = vector.broadcast %cst_22 : f32 to vector<8x1xf32>
    %48 = arith.addf %44, %47 : vector<8x1xf32>
    %49 = math.rsqrt %48 : vector<8x1xf32>
    %50 = vector.broadcast %49 : vector<8x1xf32> to vector<8x32xf32>
    %51 = arith.mulf %46, %50 : vector<8x32xf32>
    %c0_23 = arith.constant 0 : index
    %c0_24 = arith.constant 0 : index
    %52 = vector.load %arg6[%c0_23, %c0_24] : memref<32x128xf32, #tpu.memory_space<vmem>>, vector<32x128xf32>
    %cst_25 = arith.constant dense<0.000000e+00> : vector<8x128xf32>
    %53 = tpu.matmul %51, %52, %cst_25 {dimension_numbers = #tpu.dot_dimension_numbers<[1], [0], [0], [1], [0, 0, 1, 1], [], []>} : vector<8x32xf32>, vector<32x128xf32>, vector<8x128xf32> -> vector<8x128xf32>
    %c0_26 = arith.constant 0 : index
    %c0_27 = arith.constant 0 : index
    %54 = vector.load %arg7[%c0_26, %c0_27] : memref<1x128xf32, #tpu.memory_space<vmem>>, vector<1x128xf32>
    %55 = vector.broadcast %54 : vector<1x128xf32> to vector<8x128xf32>
    %56 = arith.addf %53, %55 : vector<8x128xf32>
    %c0_28 = arith.constant 0 : index
    %c0_29 = arith.constant 0 : index
    %57 = vector.load %arg8[%c0_28, %c0_29] : memref<8x128xf32, #tpu.memory_space<vmem>>, vector<8x128xf32>
    tpu.vector_store %arg8[%c0_28, %c0_29], %56 {strides = array<i32>} : memref<8x128xf32, #tpu.memory_space<vmem>>, vector<8x128xf32>,
    return
  }
  func.func @transform_0(%arg0: i32) -> (i32, i32) {
    %c0_i32 = arith.constant 0 : i32
    %c0_i32_0 = arith.constant 0 : i32
    return %arg0, %c0_i32 : i32, i32
  }
  func.func @transform_1(%arg0: i32) -> (i32, i32) {
    %c0_i32 = arith.constant 0 : i32
    %c0_i32_0 = arith.constant 0 : i32
    %c0_i32_1 = arith.constant 0 : i32
    return %c0_i32, %c0_i32_0 : i32, i32
  }
  func.func @transform_2(%arg0: i32) -> (i32, i32) {
    %c0_i32 = arith.constant 0 : i32
    %c0_i32_0 = arith.constant 0 : i32
    %c0_i32_1 = arith.constant 0 : i32
    return %c0_i32, %c0_i32_0 : i32, i32
  }
  func.func @transform_3(%arg0: i32) -> (i32, i32, i32) {
    %c0_i32 = arith.constant 0 : i32
    %c0_i32_0 = arith.constant 0 : i32
    %c0_i32_1 = arith.constant 0 : i32
    %c0_i32_2 = arith.constant 0 : i32
    return %c0_i32, %c0_i32_0, %c0_i32_1 : i32, i32, i32
  }
  func.func @transform_4(%arg0: i32) -> (i32, i32) {
    %c0_i32 = arith.constant 0 : i32
    %c0_i32_0 = arith.constant 0 : i32
    %c0_i32_1 = arith.constant 0 : i32
    return %c0_i32, %c0_i32_0 : i32, i32
  }
  func.func @transform_5(%arg0: i32) -> (i32, i32) {
    %c0_i32 = arith.constant 0 : i32
    %c0_i32_0 = arith.constant 0 : i32
    %c0_i32_1 = arith.constant 0 : i32
    return %c0_i32, %c0_i32_0 : i32, i32
  }
  func.func @transform_6(%arg0: i32) -> (i32, i32) {
    %c0_i32 = arith.constant 0 : i32
    %c0_i32_0 = arith.constant 0 : i32
    %c0_i32_1 = arith.constant 0 : i32
    return %c0_i32, %c0_i32_0 : i32, i32
  }
  func.func @transform_7(%arg0: i32) -> (i32, i32) {
    %c0_i32 = arith.constant 0 : i32
    %c0_i32_0 = arith.constant 0 : i32
    return %arg0, %c0_i32 : i32, i32
  }
}

</mosaic_0001>

<bundles_post_ra>
// kernel: tpu_custom_call.1
= control target key start
LH: loop header
LB: loop body
LE: loop exit
PB: predicated region body
PF: predicated region fallthrough
CT: control target
= control target key end

     0   :  { %12 = vsyncpa [#allocation3], 0  ;;  %s539_s0 = inlined_call_operand.hbm [shape: f32[8,16], index: 0, kind: input, shape index: {}]   ;;  %s540_s1 = inlined_call_operand.hbm [shape: f32[16,32], index: 1, kind: input, shape index: {}]   ;;  %s541_s2 = inlined_call_operand.vmem [shape: f32[1,32], index: 2, kind: input, shape index: {}]   ;;  %s542_s3 = inlined_call_operand.hbm [shape: f32[2,32,32], index: 3, kind: input, shape index: {}]   ;;  %s543_s4 = inlined_call_operand.vmem [shape: f32[2,32], index: 4, kind: input, shape index: {}]   ;;  %s544_s5 = inlined_call_operand.hbm [shape: f32[32,128], index: 5, kind: input, shape index: {}]   ;;  %s545_s6 = inlined_call_operand.vmem [shape: f32[1,128], index: 6, kind: input, shape index: {}]   ;;  %s546_s7 = inlined_call_operand.hbm [shape: f32[8,128], index: 7, kind: output, shape index: {}]  }
   0x1   :  { %13 = vsyncpa [#allocation6], 0 }
   0x2   :  { %14 = vsyncpa [#allocation9], 0  ;;  %s31_s26 = sshll.u32 %s540_s1, 4  ;;  %s32_s26 = int_to_ptr.hbm [resolvable:$true] %s31_s26 }
   0x3   :  { %15 = vsyncpa [#allocation4], 0  ;;  %s459_s27 = smov [#allocation5]   ;;  %s21_s8 = sshll.u32 %s539_s0, 4  ;;  %s22_s8 = int_to_ptr.hbm [resolvable:$true] %s21_s8 }
   0x4   :  { %s33_s28 = sshll.u32 %s459_s27, 4  ;;  %s460_s9 = smov 128   ;;  %s34_s28 = int_to_ptr.vmem [resolvable:$true] %s33_s28 }
   0x5   :  { %s461_s10 = smov 8   ;;  %s462_s11 = smov [#allocation2]  }
   0x6   :  { %39 = dma.hbm_to_vmem [thread:$0]  %s32_s26, 256, %s34_s28, [#allocation6], %s460_s9, %s460_s9, %s461_s10  }
   0x7   :  { %s23_s12 = sshll.u32 %s462_s11, 4  ;;  %s46_s15 = sshll.u32 %s542_s3, 4  ;;  %s24_s12 = int_to_ptr.vmem [resolvable:$true] %s23_s12  ;;  %s47_s15 = int_to_ptr.hbm [resolvable:$true] %s46_s15 }
   0x8   :  { %26 = dma.hbm_to_vmem [thread:$0]  %s22_s8, 128, %s24_s12, [#allocation3]  }
   0x9   :  { %s61_s17 = sshll.u32 %s544_s5, 4  ;;  %s463_s18 = smov [#allocation7]   ;;  %s62_s17 = int_to_ptr.hbm [resolvable:$true] %s61_s17 }
   0xa   :  { %s48_s19 = sshll.u32 %s463_s18, 4  ;;  %s464_s0 = smov [#allocation8]   ;;  %s49_s19 = int_to_ptr.vmem [resolvable:$true] %s48_s19 }
   0xb   :  { %54 = dma.hbm_to_vmem [thread:$0]  %s47_s15, 1024, %s49_s19, [#allocation6], %s460_s9, %s460_s9, %s461_s10  }
   0xc   :  { %s63_s20 = sshll.u32 %s464_s0, 4  ;;  %s64_s20 = int_to_ptr.vmem [resolvable:$true] %s63_s20 }
   0xd   :  { %69 = dma.hbm_to_vmem [thread:$0]  %s62_s17, 512, %s64_s20, [#allocation9], %s460_s9, %s460_s9, %s461_s10  }
   0xe   :  { %451 = dma.done.wait [#allocation3], 128  }
   0xf   :  { %452 = vsyncadd [#allocation3], 4294967168 }
  0x10   :  { %453 = dma.done.wait [#allocation6], 1280  }
  0x11   :  { %454 = vsyncadd [#allocation6], 4294966016 }
  0x12   :  { %455 = dma.done.wait [#allocation9], 512  }
  0x13   :  { %456 = vsyncadd [#allocation9], 4294966784  ;;  %v90_v0 = vld [vmem:[#allocation5 + $0x8] sm:$0xff]  ;;  %v89_v1 = vld [vmem:[#allocation5] sm:$0xff]  ;;  %vm95_vm0 = vcmask 130048   ;;  %vm125_vm1 = vcmask 261120  }
  0x14   :  { %v88_v2 = vld [vmem:[#allocation2] sm:$0xff]  ;;  %113 = vmatpush.msra.mxu0 %v90_v0  ;;  %v122_v3 = vld [vmem:[#allocation7 + $0x18] sm:$0xff]  ;;  %v121_v4 = vld [vmem:[#allocation7 + $0x10] sm:$0xff]  ;;  %v465_v51 = vmov 32.0   ;;  %s466_s25 = smov [#allocation10]   ;;  %s289_s29 = sshll.u32 %s546_s7, 4  ;;  %s290_s29 = int_to_ptr.hbm [resolvable:$true] %s289_s29 }
  0x15   :  { %141 = vmatpush.msra.mxu1 %v122_v3  ;;  %v120_v5 = vld [vmem:[#allocation7 + $0x8] sm:$0xff]  ;;  %v119_v6 = vld [vmem:[#allocation7] sm:$0xff]  ;;  %v174_v10 = vld [vmem:[#allocation7 + $0x38] sm:$0xff]  ;;  %s287_s26 = sshll.u32 %s466_s25, 4  ;;  %s288_s26 = int_to_ptr.vmem [resolvable:$true] %s287_s26 }
  0x16   :  { %114 = vmatpush.msra.mxu0 %v89_v1  ;;  %v315_v7 = vld [vmem:[%s541_s2] ss:$0 sm:$0xff]  ;;  %192 = vmatpush.msra.mxu2 %v174_v10  ;;  %v173_v12 = vld [vmem:[#allocation7 + $0x30] sm:$0xff]  ;;  %v171_v14 = vld [vmem:[#allocation7 + $0x20] sm:$0xff] }
  0x17   :  { %301 = vmatmul.msk.f32.vlgmr.msra.gmra.mxu0 %vm95_vm0, %v88_v2  ;;  %142 = vmatpush.msra.mxu1 %v121_v4  ;;  %v316_v11 = vld [vmem:[%s543_s4] ss:$0 sm:$0xff]  ;;  %v317_v32 = vld [vmem:[%s543_s4 + $0x1] ss:$0 sm:$0xff]  ;;  %v253_v63 = vld [vmem:[#allocation8 + $0x18] sm:$0xff] }
  0x18   :  { %193 = vmatpush.msra.mxu2 %v173_v12  ;;  %v172_v13 = vld [vmem:[#allocation7 + $0x28] sm:$0xff]  ;;  %273 = vmatpush.msra.mxu3 %v253_v63  ;;  %v252_v0 = vld [vmem:[#allocation8 + $0x10] sm:$0xff]  ;;  %v250_v2 = vld [vmem:[#allocation8] sm:$0xff] }
  0x19   :  { %143 = vmatpush.msra.mxu1 %v120_v5  ;;  %v251_v1 = vld [vmem:[#allocation8 + $0x8] sm:$0xff] }
  0x1a   :  { %194 = vmatpush.msra.mxu2 %v172_v13  ;;  %274 = vmatpush.msra.mxu3 %v252_v0 }
  0x1b   :  { %144 = vmatpush.msra.mxu1 %v119_v6 }
  0x1c   :  { %195 = vmatpush.msra.mxu2 %v171_v14  ;;  %275 = vmatpush.msra.mxu3 %v251_v1  ;;  %v318_v14 = vld [vmem:[%s545_s6] ss:$0 sm:$0xff] }
  0x1e   :  { %276 = vmatpush.msra.mxu3 %v250_v2 }
  0x94   :  { %v116_v8 = vpop.f32.mrf.mxu0 }
  0x95   :  { %v117_v9 = vadd.f32 %v315_v7, %v116_v8 }
  0x97   :  { %302 = vmatmul.msk.f32.vlgmr.msra.gmra.mxu1 %vm125_vm1, %v117_v9 }
 0x114   :  { %v146_v15 = vpop.f32.mrf.mxu1 }
 0x115   :  { %v147_v16 = vadd.f32 %v316_v11, %v146_v15 }
 0x117   :  { %v303_v17 = vmul.f32 -1.442695, %v147_v16 }
 0x119   :  { %319 = vpow2.f32 %v303_v17 }
 0x11f   :  { %v320_v18 = vpop.eup %319 }
 0x120   :  { %v152_v19 = vadd.f32 1.0, %v320_v18 }
 0x122   :  { %321 = vrcp.f32 %v152_v19  ;;  %v164_v23 = vand.u32 2147483648, %v152_v19  ;;  %v162_v25 = vand.u32 2147483647, %v152_v19  ;;  %vm158_vm3 = vweird.f32 %v152_v19 }
 0x124   :  { %v165_v27 = vor.u32 1.1754944e-38, %v164_v23  ;;  %vm163_vm5 = vcmp.eq.f32.partialorder %v162_v25, 8.507059e+37 }
 0x128   :  { %v322_v20 = vpop.eup %321 }
 0x129   :  { %v154_v21 = vmul.f32 %v322_v20, %v152_v19  ;;  %vm159_vm2 = vweird.f32 %v322_v20 }
 0x12a   :  { %vm160_vm4 = vmor %vm158_vm3, %vm159_vm2 }
 0x12b   :  { %v155_v22 = vsub.f32 1.0, %v154_v21 }
 0x12d   :  { %v156_v24 = vmul.f32 %v322_v20, %v155_v22 }
 0x12f   :  { %v157_v26 = vadd.f32 %v322_v20, %v156_v24 }
 0x131   :  { %v161_v28 = vsel %vm160_vm4, %v322_v20, %v157_v26 }
 0x132   :  { %v166_v29 = vsel %vm163_vm5, %v165_v27, %v161_v28 }
 0x133   :  { %v168_v30 = vmul.f32 %v166_v29, %v147_v16 }
 0x135   :  { %v169_v31 = vadd.f32 %v168_v30, %v117_v9 }
 0x137   :  { %304 = vmatmul.msk.f32.vlgmr.msra.gmra.mxu2 %vm125_vm1, %v169_v31 }
 0x1ba   :  { %v197_v33 = vpop.f32.mrf.mxu2 }
 0x1bb   :  { %v198_v34 = vadd.f32 %v317_v32, %v197_v33 }
 0x1bd   :  { %v305_v35 = vmul.f32 -1.442695, %v198_v34 }
 0x1bf   :  { %323 = vpow2.f32 %v305_v35 }
 0x1c5   :  { %v324_v36 = vpop.eup %323 }
 0x1c6   :  { %v203_v37 = vadd.f32 1.0, %v324_v36 }
 0x1c8   :  { %325 = vrcp.f32 %v203_v37  ;;  %v215_v41 = vand.u32 2147483648, %v203_v37  ;;  %v213_v43 = vand.u32 2147483647, %v203_v37  ;;  %vm209_vm7 = vweird.f32 %v203_v37 }
 0x1c9   :  { %327 = vrcp.f32 %v465_v51 }
 0x1ca   :  { %v216_v45 = vor.u32 1.1754944e-38, %v215_v41  ;;  %vm214_vm9 = vcmp.eq.f32.partialorder %v213_v43, 8.507059e+37 }
 0x1ce   :  { %v326_v38 = vpop.eup %325 }
 0x1cf   :  { %v205_v39 = vmul.f32 %v326_v38, %v203_v37  ;;  %vm210_vm6 = vweird.f32 %v326_v38  ;;  %v328_v52 = vpop.eup %327 }
 0x1d0   :  { %vm211_vm8 = vmor %vm209_vm7, %vm210_vm6  ;;  %v225_v53 = vmul.f32 32.0, %v328_v52  ;;  %vm229_vm10 = vweird.f32 %v328_v52 }
 0x1d1   :  { %v206_v40 = vsub.f32 1.0, %v205_v39 }
 0x1d2   :  { %v226_v54 = vsub.f32 1.0, %v225_v53 }
 0x1d3   :  { %v207_v42 = vmul.f32 %v326_v38, %v206_v40 }
 0x1d4   :  { %v227_v55 = vmul.f32 %v328_v52, %v226_v54 }
 0x1d5   :  { %v208_v44 = vadd.f32 %v326_v38, %v207_v42 }
 0x1d6   :  { %v228_v56 = vadd.f32 %v328_v52, %v227_v55 }
 0x1d7   :  { %v212_v46 = vsel %vm211_vm8, %v326_v38, %v208_v44 }
 0x1d8   :  { %v217_v47 = vsel %vm214_vm9, %v216_v45, %v212_v46  ;;  %v230_v57 = vsel %vm229_vm10, %v328_v52, %v228_v56 }
 0x1d9   :  { %v219_v48 = vmul.f32 %v217_v47, %v198_v34 }
 0x1db   :  { %v220_v49 = vadd.f32 %v219_v48, %v169_v31 }
 0x1dd   :  { %v221_v50 = vsel %vm125_vm1, %v220_v49, 0.0 }
 0x1de   :  { %222 = vadd.xlane.f32.xlu0 %v221_v50 }
 0x251   :  { %v223_v58 = vpop.xlane.xlu0 %222 }
 0x252   :  { %v231_v59 = vmul.f32 %v230_v57, %v223_v58 }
 0x254   :  { %v232_v60 = vsub.f32 %v220_v49, %v231_v59 }
 0x256   :  { %v233_v61 = vmul.f32 %v232_v60, %v232_v60 }
 0x258   :  { %v234_v62 = vsel %vm125_vm1, %v233_v61, 0.0 }
 0x259   :  { %235 = vadd.xlane.f32.xlu0 %v234_v62 }
 0x2cc   :  { %v236_v3 = vpop.xlane.xlu0 %235 }
 0x2cd   :  { %v237_v4 = vmul.f32 %v236_v3, %v230_v57 }
 0x2cf   :  { %v238_v5 = vadd.f32 1e-05, %v237_v4 }
 0x2d1   :  { %329 = vrsqrt.f32 %v238_v5  ;;  %vm245_vm12 = vweird.f32 %v238_v5 }
 0x2d7   :  { %v330_v6 = vpop.eup %329 }
 0x2d8   :  { %v240_v7 = vmul.f32 %v330_v6, %v238_v5  ;;  %vm246_vm11 = vweird.f32 %v330_v6 }
 0x2d9   :  { %vm247_vm13 = vmor %vm245_vm12, %vm246_vm11 }
 0x2da   :  { %v241_v8 = vmul.f32 %v330_v6, %v240_v7 }
 0x2dc   :  { %v242_v9 = vmul.f32 0.5, %v241_v8 }
 0x2de   :  { %v243_v10 = vsub.f32 1.5, %v242_v9 }
 0x2e0   :  { %v244_v11 = vmul.f32 %v330_v6, %v243_v10 }
 0x2e2   :  { %v248_v12 = vsel %vm247_vm13, %v330_v6, %v244_v11 }
 0x2e3   :  { %v249_v13 = vmul.f32 %v248_v12, %v232_v60 }
 0x2e5   :  { %306 = vmatmul.msk.f32.vlgmr.msra.gmra.mxu3 %vm125_vm1, %v249_v13 }
 0x368   :  { %v278_v15 = vpop.f32.mrf.mxu3 }
 0x369   :  { %v279_v16 = vadd.f32 %v318_v14, %v278_v15 }
 0x36b   :  { %281 = vst [vmem:[#allocation10] sm:$0xff] %v279_v16 }
 0x36c   :  { %292 = dma.vmem_to_hbm [thread:$0]  %s288_s26, 128, %s290_s29, [#allocation4]  }
 0x36d   :  { %457 = dma.done.wait [#allocation4], 128  }
 0x36e   :  { %458 = vsyncadd [#allocation4], 4294967168 }
 0x36f   :  { %297 = vsyncpa [#allocation3], 1 }
 0x370   :  { %298 = vsyncpa [#allocation6], 1 }
 0x371   :  { %299 = vsyncpa [#allocation9], 1 }
 0x372   :  { %300 = vsyncpa [#allocation4], 1 }

</bundles_post_ra>
